<compile_context>
chip_gen: v7x
topology: tpu7x:2x2x1
jax: 0.10.0
libtpu: 0.0.40
codegen_flags: <defaults>
</compile_context>

<pallas_src>
import functools

import jax
import jax.numpy as jnp
from jax.experimental import pallas as pl
from jax.experimental.pallas import tpu as pltpu

_LANES = 128
_SUBLANES = 8


def _dice_kernel(x_ref, t_ref, dice_ref, inter_acc, union_acc, *,
                 threshold, smooth, apply_threshold, rows_tile, tail_rows,
                 need_mask):
    k = pl.program_id(1)
    last = pl.num_programs(1) - 1

    @pl.when(k == 0)
    def _init():
        inter_acc[...] = jnp.zeros_like(inter_acc)
        union_acc[...] = jnp.zeros_like(union_acc)

    def _accumulate(mask):
        x = x_ref[0]                                  # (rows_tile, 128), native dtype
        t = t_ref[0].astype(jnp.float32)
        if apply_threshold:
            # Compare in the input dtype (bf16 VPU on v6e/v7x), then widen the
            # 0/1 prediction to f32 for accumulation.
            pred_f = (x > jnp.asarray(threshold, dtype=x.dtype)).astype(jnp.float32)
        else:
            pred_f = x.astype(jnp.float32)            # non-float inputs used as-is
        if mask is not None:
            pred_f = jnp.where(mask, pred_f, 0.0)
            t = jnp.where(mask, t, 0.0)

        inter_part = pred_f * t                       # elementwise only (VPU)
        union_part = pred_f + t
        if rows_tile % _SUBLANES == 0 and rows_tile > _SUBLANES:
            # Collapse the tile to a single (8, 128) vreg with pure vreg adds
            # (leading-axis reduce: no XLU, no full-tile accumulator RMW).
            g = rows_tile // _SUBLANES
            inter_part = inter_part.reshape(g, _SUBLANES, _LANES).sum(axis=0)
            union_part = union_part.reshape(g, _SUBLANES, _LANES).sum(axis=0)
        inter_acc[...] += inter_part
        union_acc[...] += union_part

    if need_mask:
        # Only the final row tile is ragged: every full tile takes the
        # unmasked fast path; the mask (static iota vs static remainder) is
        # built and applied only on the boundary step.
        @pl.when(k != last)
        def _full_tiles():
            _accumulate(None)

        @pl.when(k == last)
        def _tail_tile():
            row_idx = jax.lax.broadcasted_iota(jnp.int32, (rows_tile, _LANES), 0)
            _accumulate(row_idx < tail_rows)
    else:
        _accumulate(None)

    @pl.when(k == last)
    def _finalize():
        inter = jnp.sum(inter_acc[...], axis=1, keepdims=True)   # lane (XLU) reduce
        inter = jnp.sum(inter, axis=0, keepdims=True)            # (1, 1)
        union = jnp.sum(union_acc[...], axis=1, keepdims=True)
        union = jnp.sum(union, axis=0, keepdims=True)            # (1, 1)
        dice = (2.0 * inter + smooth) / (union + smooth)         # (1, 1)
        dice_ref[...] = jnp.broadcast_to(dice.reshape(1, 1, 1), dice_ref.shape)


def dice_score(inputs, targets, *, threshold=0.5, smooth=1e-6, block_rows=8192):
    """Dice score (batch mean), equivalent to PyTorch DiceScore.forward.

    inputs/targets: (B, ...) arrays. inputs are thresholded only if floating
    point (same as the PyTorch module). Returns a scalar float32.
    """
    B = inputs.shape[0]
    x = inputs.reshape(B, -1)
    t = targets.reshape(B, -1)
    n = x.shape[1]

    apply_threshold = bool(jnp.issubdtype(x.dtype, jnp.floating))

    # Pad the lane axis only when N is not a multiple of 128. Zero padding is
    # neutral because `0 > threshold` is False for threshold >= 0 (the
    # module's enforced (0, 1) range) and zero targets add nothing.
    lane_pad = (-n) % _LANES
    if lane_pad:
        if apply_threshold:
            assert threshold >= 0.0, "negative threshold requires lane masking"
        x = jnp.pad(x, ((0, 0), (0, lane_pad)))
        t = jnp.pad(t, ((0, 0), (0, lane_pad)))
    rows = x.shape[1] // _LANES
    x = x.reshape(B, rows, _LANES)
    t = t.reshape(B, rows, _LANES)

    # Round the streamed tile to a multiple of 32 rows so the (rows_tile, 128)
    # block satisfies every dtype's sublane tile (8 f32 / 16 bf16 / 32 int8).
    block_rows = max(32, (int(block_rows) // 32) * 32)
    if rows <= block_rows:
        rows_tile = rows                 # whole reduction axis in one tile
        n_row_tiles = 1
    else:
        rows_tile = block_rows
        n_row_tiles = pl.cdiv(rows, rows_tile)
    tail_rows = rows - (n_row_tiles - 1) * rows_tile
    need_mask = tail_rows != rows_tile

    # Per-tile partials collapse to one (8, 128) vreg when sublane aligned;
    # otherwise (single small tile, one step per batch) keep them flat.
    acc_rows = _SUBLANES if rows_tile % _SUBLANES == 0 else rows_tile

    kernel = functools.partial(
        _dice_kernel,
        threshold=float(threshold),
        smooth=float(smooth),
        apply_threshold=apply_threshold,
        rows_tile=rows_tile,
        tail_rows=tail_rows,
        need_mask=need_mask,
    )

    # VMEM budget for this tiling: double-buffered native-dtype input tiles +
    # the (8, 128) accumulators + output block. Bump the scoped limit so big
    # tiles keep full double-buffering on v5e (16 MiB default), stay under
    # v7x's 64 MiB physical VMEM.
    x_tile_bytes = rows_tile * _LANES * x.dtype.itemsize
    t_tile_bytes = rows_tile * _LANES * t.dtype.itemsize
    vmem_need = 2 * (x_tile_bytes + t_tile_bytes)
    vmem_need += 2 * acc_rows * _LANES * 4
    vmem_need += 2 * _SUBLANES * _LANES * 4
    vmem_limit = int(min(max(vmem_need + (8 << 20), 32 << 20), 64 << 20))

    n_elems = B * rows * _LANES
    cost = pl.CostEstimate(
        flops=6 * n_elems,
        transcendentals=0,
        bytes_accessed=(n_elems * (x.dtype.itemsize + t.dtype.itemsize)
                        + B * _SUBLANES * _LANES * 4),
    )

    # Per-batch dice is broadcast into a distinct, lane-aligned (8, 128)
    # output tile; the batch mean is a trivial O(B) op in the wrapper.
    out = pl.pallas_call(
        kernel,
        out_shape=jax.ShapeDtypeStruct((B, _SUBLANES, _LANES), jnp.float32),
        grid_spec=pltpu.PrefetchScalarGridSpec(
            num_scalar_prefetch=0,
            grid=(B, n_row_tiles),
            in_specs=[
                pl.BlockSpec((1, rows_tile, _LANES), lambda b, k: (b, k, 0)),
                pl.BlockSpec((1, rows_tile, _LANES), lambda b, k: (b, k, 0)),
            ],
            out_specs=pl.BlockSpec((1, _SUBLANES, _LANES),
                                   lambda b, k: (b, 0, 0)),
            scratch_shapes=[
                pltpu.VMEM((acc_rows, _LANES), jnp.float32),  # intersection
                pltpu.VMEM((acc_rows, _LANES), jnp.float32),  # union
            ],
        ),
        compiler_params=pltpu.CompilerParams(
            # Batch axis "parallel" (megacore splits batches on v7x);
            # reduction axis "arbitrary" (accumulators resident across it).
            dimension_semantics=("parallel", "arbitrary"),
            vmem_limit_bytes=vmem_limit,
        ),
        cost_estimate=cost,
    )(x, t)

    return jnp.mean(out[:, 0, 0])


def _dice_ref(inputs, targets, threshold=0.5, smooth=1e-6):
    B = inputs.shape[0]
    x = (inputs.reshape(B, -1) > threshold).astype(jnp.float32)
    t = targets.reshape(B, -1).astype(jnp.float32)
    inter = jnp.sum(x * t, axis=1)
    union = jnp.sum(x, axis=1) + jnp.sum(t, axis=1)
    return jnp.mean((2.0 * inter + smooth) / (union + smooth))


if __name__ == "__main__":
    key = jax.random.PRNGKey(0)
    k1, k2 = jax.random.split(key)
    B, C, H, W = 2, 4, 16, 16
    inputs = jax.random.uniform(k1, (B, C, H, W), dtype=jnp.float32)
    targets = (jax.random.uniform(k2, (B, C, H, W)) > 0.5).astype(jnp.float32)

    out = dice_score(inputs, targets, threshold=0.5, smooth=1e-6)
    out = jax.block_until_ready(out)

    ref = _dice_ref(inputs, targets, threshold=0.5, smooth=1e-6)
    assert jnp.allclose(out, ref, atol=1e-6, rtol=1e-6), (out, ref)
    print("KERNEL_OK")
</pallas_src>

<mosaic_0001>
module attributes {stable_mosaic.version = 11 : i64} {
  func.func @_dice_kernel(%arg0: i32, %arg1: i32, %arg2: memref<1x8x128xf32, #tpu.memory_space<vmem>>, %arg3: memref<1x8x128xf32, #tpu.memory_space<vmem>>, %arg4: memref<1x8x128xf32, #tpu.memory_space<vmem>>, %arg5: memref<8x128xf32, #tpu.memory_space<vmem>>, %arg6: memref<8x128xf32, #tpu.memory_space<vmem>>) attributes {dimension_semantics = [#tpu.dimension_semantics<parallel>, #tpu.dimension_semantics<arbitrary>], iteration_bounds = array<i64: 2, 1>, scalar_prefetch = 0 : i64, scratch_operands = 2 : i64, tpu.core_type = #tpu.core_type<tc>, window_params = [{transform_indices = @transform_0, window_bounds = array<i64: 1, 8, 128>}, {transform_indices = @transform_1, window_bounds = array<i64: 1, 8, 128>}, {transform_indices = @transform_2, window_bounds = array<i64: 1, 8, 128>}]} {
    %c0_i32 = arith.constant 0 : i32
    %0 = arith.cmpi eq, %arg1, %c0_i32 : i32
    %1 = arith.extui %0 : i1 to i32
    %c0_i32_0 = arith.constant 0 : i32
    %2 = arith.cmpi ne, %1, %c0_i32_0 : i32
    scf.if %2 {
      %cst_16 = arith.constant 0.000000e+00 : f32
      %22 = vector.broadcast %cst_16 : f32 to vector<8x128xf32>
      %c0_17 = arith.constant 0 : index
      %c0_18 = arith.constant 0 : index
      %23 = vector.load %arg5[%c0_17, %c0_18] : memref<8x128xf32, #tpu.memory_space<vmem>>, vector<8x128xf32>
      tpu.vector_store %arg5[%c0_17, %c0_18], %22 {strides = array<i32>} : memref<8x128xf32, #tpu.memory_space<vmem>>, vector<8x128xf32>,
      %cst_19 = arith.constant 0.000000e+00 : f32
      %24 = vector.broadcast %cst_19 : f32 to vector<8x128xf32>
      %c0_20 = arith.constant 0 : index
      %c0_21 = arith.constant 0 : index
      %25 = vector.load %arg6[%c0_20, %c0_21] : memref<8x128xf32, #tpu.memory_space<vmem>>, vector<8x128xf32>
      tpu.vector_store %arg6[%c0_20, %c0_21], %24 {strides = array<i32>} : memref<8x128xf32, #tpu.memory_space<vmem>>, vector<8x128xf32>,
    } else {
    }
    %c0 = arith.constant 0 : index
    %c0_1 = arith.constant 0 : index
    %c0_2 = arith.constant 0 : index
    %3 = vector.load %arg2[%c0, %c0_1, %c0_2] : memref<1x8x128xf32, #tpu.memory_space<vmem>>, vector<1x8x128xf32>
    %4 = vector.shape_cast %3 : vector<1x8x128xf32> to vector<8x128xf32>
    %c0_3 = arith.constant 0 : index
    %c0_4 = arith.constant 0 : index
    %c0_5 = arith.constant 0 : index
    %5 = vector.load %arg3[%c0_3, %c0_4, %c0_5] : memref<1x8x128xf32, #tpu.memory_space<vmem>>, vector<1x8x128xf32>
    %6 = vector.shape_cast %5 : vector<1x8x128xf32> to vector<8x128xf32>
    %cst = arith.constant 5.000000e-01 : f32
    %7 = vector.broadcast %cst : f32 to vector<8x128xf32>
    %8 = arith.cmpf ogt, %4, %7 : vector<8x128xf32>
    %9 = arith.extui %8 : vector<8x128xi1> to vector<8x128xi32>
    %10 = arith.sitofp %9 : vector<8x128xi32> to vector<8x128xf32>
    %11 = arith.mulf %10, %6 : vector<8x128xf32>
    %12 = arith.addf %10, %6 : vector<8x128xf32>
    %c0_6 = arith.constant 0 : index
    %c0_7 = arith.constant 0 : index
    %13 = vector.load %arg5[%c0_6, %c0_7] : memref<8x128xf32, #tpu.memory_space<vmem>>, vector<8x128xf32>
    %14 = arith.addf %13, %11 : vector<8x128xf32>
    %c0_8 = arith.constant 0 : index
    %c0_9 = arith.constant 0 : index
    %15 = vector.load %arg5[%c0_8, %c0_9] : memref<8x128xf32, #tpu.memory_space<vmem>>, vector<8x128xf32>
    tpu.vector_store %arg5[%c0_8, %c0_9], %14 {strides = array<i32>} : memref<8x128xf32, #tpu.memory_space<vmem>>, vector<8x128xf32>,
    %c0_10 = arith.constant 0 : index
    %c0_11 = arith.constant 0 : index
    %16 = vector.load %arg6[%c0_10, %c0_11] : memref<8x128xf32, #tpu.memory_space<vmem>>, vector<8x128xf32>
    %17 = arith.addf %16, %12 : vector<8x128xf32>
    %c0_12 = arith.constant 0 : index
    %c0_13 = arith.constant 0 : index
    %18 = vector.load %arg6[%c0_12, %c0_13] : memref<8x128xf32, #tpu.memory_space<vmem>>, vector<8x128xf32>
    tpu.vector_store %arg6[%c0_12, %c0_13], %17 {strides = array<i32>} : memref<8x128xf32, #tpu.memory_space<vmem>>, vector<8x128xf32>,
    %c0_i32_14 = arith.constant 0 : i32
    %19 = arith.cmpi eq, %arg1, %c0_i32_14 : i32
    %20 = arith.extui %19 : i1 to i32
    %c0_i32_15 = arith.constant 0 : i32
    %21 = arith.cmpi ne, %20, %c0_i32_15 : i32
    scf.if %21 {
      %c0_16 = arith.constant 0 : index
      %c0_17 = arith.constant 0 : index
      %22 = vector.load %arg5[%c0_16, %c0_17] : memref<8x128xf32, #tpu.memory_space<vmem>>, vector<8x128xf32>
      %cst_18 = arith.constant dense<0.000000e+00> : vector<8xf32>
      %23 = vector.multi_reduction <add>, %22, %cst_18 [1] : vector<8x128xf32> to vector<8xf32>
      %24 = vector.shape_cast %23 : vector<8xf32> to vector<8x1xf32>
      %cst_19 = arith.constant dense<0.000000e+00> : vector<1xf32>
      %25 = vector.multi_reduction <add>, %24, %cst_19 [0] : vector<8x1xf32> to vector<1xf32>
      %26 = vector.shape_cast %25 : vector<1xf32> to vector<1x1xf32>
      %c0_20 = arith.constant 0 : index
      %c0_21 = arith.constant 0 : index
      %27 = vector.load %arg6[%c0_20, %c0_21] : memref<8x128xf32, #tpu.memory_space<vmem>>, vector<8x128xf32>
      %cst_22 = arith.constant dense<0.000000e+00> : vector<8xf32>
      %28 = vector.multi_reduction <add>, %27, %cst_22 [1] : vector<8x128xf32> to vector<8xf32>
      %29 = vector.shape_cast %28 : vector<8xf32> to vector<8x1xf32>
      %cst_23 = arith.constant dense<0.000000e+00> : vector<1xf32>
      %30 = vector.multi_reduction <add>, %29, %cst_23 [0] : vector<8x1xf32> to vector<1xf32>
      %31 = vector.shape_cast %30 : vector<1xf32> to vector<1x1xf32>
      %cst_24 = arith.constant 2.000000e+00 : f32
      %32 = vector.broadcast %cst_24 : f32 to vector<1x1xf32>
      %33 = arith.mulf %32, %26 : vector<1x1xf32>
      %cst_25 = arith.constant 9.99999997E-7 : f32
      %34 = vector.broadcast %cst_25 : f32 to vector<1x1xf32>
      %35 = arith.addf %33, %34 : vector<1x1xf32>
      %cst_26 = arith.constant 9.99999997E-7 : f32
      %36 = vector.broadcast %cst_26 : f32 to vector<1x1xf32>
      %37 = arith.addf %31, %36 : vector<1x1xf32>
      %38 = arith.divf %35, %37 : vector<1x1xf32>
      %39 = vector.shape_cast %38 : vector<1x1xf32> to vector<1x1x1xf32>
      %40 = vector.shape_cast %39 : vector<1x1x1xf32> to vector<1x1x1xf32>
      %41 = vector.broadcast %40 : vector<1x1x1xf32> to vector<1x8x128xf32>
      %c0_27 = arith.constant 0 : index
      %c0_28 = arith.constant 0 : index
      %c0_29 = arith.constant 0 : index
      %42 = vector.load %arg4[%c0_27, %c0_28, %c0_29] : memref<1x8x128xf32, #tpu.memory_space<vmem>>, vector<1x8x128xf32>
      tpu.vector_store %arg4[%c0_27, %c0_28, %c0_29], %41 {strides = array<i32>} : memref<1x8x128xf32, #tpu.memory_space<vmem>>, vector<1x8x128xf32>,
    } else {
    }
    return
  }
  func.func @transform_0(%arg0: i32, %arg1: i32) -> (i32, i32, i32) {
    %c0_i32 = arith.constant 0 : i32
    %c0_i32_0 = arith.constant 0 : i32
    return %arg0, %arg1, %c0_i32 : i32, i32, i32
  }
  func.func @transform_1(%arg0: i32, %arg1: i32) -> (i32, i32, i32) {
    %c0_i32 = arith.constant 0 : i32
    %c0_i32_0 = arith.constant 0 : i32
    return %arg0, %arg1, %c0_i32 : i32, i32, i32
  }
  func.func @transform_2(%arg0: i32, %arg1: i32) -> (i32, i32, i32) {
    %c0_i32 = arith.constant 0 : i32
    %c0_i32_0 = arith.constant 0 : i32
    %c0_i32_1 = arith.constant 0 : i32
    return %arg0, %c0_i32, %c0_i32_0 : i32, i32, i32
  }
}

</mosaic_0001>

<bundles_post_ra>
// kernel: tpu_custom_call.1
= control target key start
LH: loop header
LB: loop body
LE: loop exit
PB: predicated region body
PF: predicated region fallthrough
CT: control target
= control target key end

     0   :  { %7 = vsyncpa [#allocation5], 0  ;;  %s856_s0 = inlined_call_operand.hbm [shape: f32[2,8,128], index: 0, kind: input, shape index: {}]   ;;  %s857_s1 = inlined_call_operand.hbm [shape: f32[2,8,128], index: 1, kind: input, shape index: {}]   ;;  %s858_s2 = inlined_call_operand.hbm [shape: f32[2,8,128], index: 2, kind: output, shape index: {}]  }
   0x1   :  { %9 = vsyncpa [#allocation5 + $0x1], 0 }
   0x2   :  { %10 = vsyncpa [#allocation8], 0 }
   0x3   :  { %12 = vsyncpa [#allocation8 + $0x1], 0 }
   0x4   :  { %13 = vsyncpa [#allocation6], 0 }
   0x5   :  { %15 = vsyncpa [#allocation6 + $0x1], 0  ;;  %s631_s9 = smov 0   ;;  %s633_s10 = smov 0  }
   0x6   :  { %s635_s11 = smov 0   ;;  %s637_s12 = smov 0  }
   0x7   :  { %s639_s13 = smov 0   ;;  %s641_s14 = smov 0  }
   0x8 LB: > { %s377_s15 = sadd.s32 4294967295, %s610_s14   ;;  %s378_s16 = sadd.s32 4294967294, %s610_s14   ;;  %s610_s14 = sphi %s641_s14, %s21_s14   ;;  %s606_s13 = sphi %s639_s13, %s878_s13   ;;  %s602_s12 = sphi %s637_s12, %s877_s12   ;;  %s598_s11 = sphi %s635_s11, %s876_s11   ;;  %s594_s10 = sphi %s633_s10, %s875_s10   ;;  %s590_s9 = sphi %s631_s9, %s874_s9  }
   0x9   : > { %s33_s17 = sadd.s32 1, %s606_s13  ;;  %s42_s18 = sadd.s32 1, %s598_s11 }
   0xa   : > { %p35_p0 = scmp.ge.s32.totalorder %s33_s17, 2  ;;  %p49_p1 = scmp.ne.s32.totalorder %s598_s11, %s594_s10 }
   0xb   : > { %p50_p2 = scmp.eq.s32.totalorder %s610_s14, 0  ;;  %p55_p3 = scmp.ne.s32.totalorder %s594_s10, %s590_s9 }
   0xc   : > { %s880_s17 = smov (%p35_p0, %s33_s17), 0  ;;  %p56_p5 = scmp.eq.s32.totalorder %s377_s15, 0 }
   0xd   : > { %p672_p4 = por %p50_p2, %p49_p1  ;;  %s37_s20 = ssub.s32 %s606_s13, %s880_s17 }
   0xe   : > { %p107_p6 = scmp.eq.s32.totalorder %s377_s15, 1  ;;  %p40_p7 = scmp.eq.s32.totalorder %s37_s20, 0 }
   0xf   : > { %p678_p8 = por %p56_p5, %p55_p3  ;;  %p113_p10 = scmp.eq.s32.totalorder %s378_s16, 1 }
  0x10   : > { %p682_p9 = por %p107_p6, %p49_p1  ;;  %p411_p13 = scmp.lt.s32.totalorder %s610_s14, 2 }
  0x11   : > { %s862_s21 = scalar_select %p678_p8, 1, 0 }
  0x12   : > { %s863_s22 = scalar_select %p682_p9, 1, 0 }
  0x13   : > { %s687_s23 = scalar_select %p40_p7, %s598_s11, %s42_s18  }
  0x14   : > { %p689_p11 = por %p113_p10, %p55_p3  ;;  %s696_s25 = sand.u32 1, %s598_s11  }
  0x15   : > { %s381_s26 = sshll.u32 %s696_s25, 3  ;;  %s382_s27 = sshll.u32 %s606_s13, 7 }
  0x16   : > { %s864_s24 = scalar_select %p689_p11, 1, 0 }
  0x17   : > { %s705_s30 = scalar_lea.hbm %s856_s0, %s382_s27  ;;  %s137_s3 = scalar_lea.vmem [#allocation4], %s381_s26 }
  0x18   : > { %s145_s4 = sshll.u32 %s137_s3, 4  ;;  %p713_p0 = pnand %p411_p13, %p672_p4  ;;  %s709_s4 = int_to_ptr.vmem [resolvable:$true] %s145_s4 }
  0x19   : > { %s134_s6 = scalar_lea.sflag [#allocation5], %s696_s25  ;;  %s464_s7 = scalar_lea.hbm %s705_s30, 128 }
  0x1a   : > { %p465_p3 = scmp.ne.s32.totalorder %s705_s30, %s464_s7  ;;  %p466_p5 = pneg %p713_p0 }
  0x1b   : > { %s469_s16 = scalar_lea.hbm %s856_s0, 256  ;;  %p470_p4 = scmp.lt.u32.totalorder %s705_s30, %s856_s0 }
  0x1c   : > { %p467_p6 = pnand %p466_p5, %p465_p3  ;;  %p471_p10 = scmp.lt.u32.totalorder %s469_s16, %s464_s7 }
  0x1d   : > { %p473_p12 = scmp.lt.u32.totalorder %s464_s7, %s705_s30 }
  0x1e   : > { %p468_p7 = pneg %p467_p6  ;;  %p472_p13 = por %p471_p10, %p470_p4 }
  0x20   : > { %p474_p1 = por %p473_p12, %p472_p13 }
  0x22   : > { %p475_p2 = pnand %p474_p1, %p468_p7 }
  0x24   : > { %478 = shalt.err (!%p475_p2)
}
  0x25   : > { %s479_s20 = scalar_lea.vmem %s709_s4, 128  ;;  %s612_s28 = smov [#allocation4]  }
  0x26   : > { %p480_p3 = scmp.ne.s32.totalorder %s709_s4, %s479_s20  ;;  %s484_s29 = sshll.u32 %s612_s28, 4  ;;  %s485_s29 = int_to_ptr.vmem [resolvable:$false] %s484_s29 }
  0x27   : > { %s486_s3 = scalar_lea.vmem %s485_s29, 256  ;;  %p487_p9 = scmp.lt.s32.totalorder %s709_s4, %s485_s29 }
  0x28   : > { %p482_p6 = pnand %p480_p3, %p466_p5  ;;  %p488_p4 = scmp.lt.s32.totalorder %s486_s3, %s479_s20 }
  0x2a   : > { %p483_p11 = pneg %p482_p6  ;;  %p489_p10 = por %p488_p4, %p487_p9 }
  0x2c   : > { %p490_p12 = pnand %p489_p10, %p483_p11 }
  0x2e   : > { %493 = shalt.err (!%p490_p12)
}
  0x2f   : > { %403 = dma.hbm_to_vmem [thread:$0]  (!%p713_p0), %s705_s30, 128, %s709_s4, %s134_s6  }
  0x30   : > { %p866_p1 = scmp.lt.s32.totalorder %s610_s14, 3  ;;  %p867_p2 = scmp.ge.s32.totalorder %s610_s14, 1 }
  0x31   : > { %s758_s16 = scalar_lea.hbm %s857_s1, %s382_s27  ;;  %s156_s18 = scalar_lea.vmem [#allocation7], %s381_s26 }
  0x32   : > { %p749_p7 = pnand %p867_p2, %p866_p1  ;;  %s164_s19 = sshll.u32 %s156_s18, 4  ;;  %s165_s19 = int_to_ptr.vmem [resolvable:$true] %s164_s19 }
  0x33   : > { %s153_s30 = scalar_lea.sflag [#allocation8], %s696_s25  ;;  %s494_s4 = scalar_lea.hbm %s758_s16, 128 }
  0x34   : > { %s868_s7 = scalar_select %p749_p7, 1, 0 }
  0x35   : > { %p495_p9 = scmp.ne.s32.totalorder %s758_s16, %s494_s4  ;;  %s499_s27 = scalar_lea.hbm %s857_s1, 256 }
  0x36   : > { %p500_p3 = scmp.lt.u32.totalorder %s758_s16, %s857_s1  ;;  %p501_p6 = scmp.lt.u32.totalorder %s499_s27, %s494_s4 }
  0x37   : > { %p497_p11 = pnand %p495_p9, %p466_p5  ;;  %p503_p10 = scmp.lt.u32.totalorder %s494_s4, %s758_s16 }
  0x38   : > { %p502_p4 = por %p501_p6, %p500_p3 }
  0x39   : > { %p498_p13 = pneg %p497_p11 }
  0x3a   : > { %p504_p12 = por %p503_p10, %p502_p4 }
  0x3c   : > { %p505_p1 = pnand %p504_p12, %p498_p13 }
  0x3e   : > { %508 = shalt.err (!%p505_p1)
}
  0x3f   : > { %s509_s25 = scalar_lea.vmem %s165_s19, 128  ;;  %s613_s26 = smov [#allocation7]  }
  0x40   : > { %p510_p2 = scmp.ne.s32.totalorder %s165_s19, %s509_s25  ;;  %s514_s3 = sshll.u32 %s613_s26, 4  ;;  %s515_s3 = int_to_ptr.vmem [resolvable:$false] %s514_s3 }
  0x41   : > { %s516_s8 = scalar_lea.vmem %s515_s3, 256  ;;  %p517_p8 = scmp.lt.s32.totalorder %s165_s19, %s515_s3 }
  0x42   : > { %p512_p9 = pnand %p510_p2, %p466_p5  ;;  %p518_p7 = scmp.lt.s32.totalorder %s516_s8, %s509_s25 }
  0x44   : > { %p513_p11 = pneg %p512_p9  ;;  %p519_p3 = por %p518_p7, %p517_p8 }
  0x46   : > { %p520_p6 = pnand %p519_p3, %p513_p11 }
  0x48   : > { %523 = shalt.err (!%p520_p6)
}
  0x49   : > { %406 = dma.hbm_to_vmem [thread:$0]  (!%p713_p0), %s758_s16, 128, %s165_s19, %s153_s30  }
  0x4a   : > { %p869_p13 = scmp.ne.s32.totalorder %s868_s7, 0 }
  0x4b   : > { %s785_s15 = sand.u32 (!%p869_p13), 1, %s594_s10   ;;  %p870_p8 = scmp.ne.s32.totalorder (!%p869_p13), %s862_s21, 0 }
  0x4c   : > { %173 = sbr.rel (%p869_p13) target bundleno = 274 (0x112), region = 28  ;;  %s788_s18 = sshll.u32 (!%p869_p13), %s785_s15, 3 }
  0x4d   : > { %s176_s4 = scalar_lea.sflag (!%p869_p13), [#allocation5], %s785_s15  ;;  %s179_s6 = scalar_lea.vmem (!%p869_p13), [#allocation4], %s788_s18 }
  0x53   : > { %577 = dma.done.wait (%p870_p8), %s176_s4, 128  }
  0x54   : > { %579 = vsyncadd (%p870_p8), %s176_s4, 4294967168  ;;  %s185_s5 = scalar_lea.sflag [#allocation8], %s785_s15  ;;  %s188_s7 = scalar_lea.vmem [#allocation7], %s788_s18 }
  0x55   : > { %581 = dma.done.wait (%p870_p8), %s185_s5, 128  }
  0x56   : > { %583 = vsyncadd (%p870_p8), %s185_s5, 4294967168  ;;  %v220_v0 = vld [vmem:[%s179_s6] sm:$0xff]  ;;  %v221_v1 = vld [vmem:[%s188_s7] sm:$0xff]  ;;  %v614_v2 = vmov 0.0   ;;  %s391_s21 = sshll.u32 %s602_s12, 7  ;;  %s213_s16 = scalar_lea.vmem [#allocation9], %s788_s18 }
  0x57   : > { %vm222_vm0 = vcmp.gt.f32.partialorder %v220_v0, 0.5  ;;  %s274_s19 = sshll.u32 %s213_s16, 4  ;;  %s807_s27 = scalar_lea.hbm %s858_s2, %s391_s21  ;;  %s809_s19 = int_to_ptr.vmem [resolvable:$true] %s274_s19 }
  0x58   : > { %v389_v3 = vsel %vm222_vm0, 1.0, %v614_v2  ;;  %s261_s28 = scalar_lea.sflag [#allocation6], %s785_s15  ;;  %s524_s29 = scalar_lea.vmem %s809_s19, 128 }
  0x59   : > { %v226_v4 = vadd.f32 %v389_v3, %v221_v1  ;;  %v225_v5 = vmul.f32 %v389_v3, %v221_v1  ;;  %p525_p0 = scmp.ne.s32.totalorder %s809_s19, %s524_s29  ;;  %p871_p5 = scmp.ne.s32.totalorder %s863_s22, 0 }
  0x5a   : > { %s615_s12 = smov [#allocation9]  }
  0x5b   : > { %246 = vadd.xlane.f32.xlu0 %v226_v4  ;;  %p526_p7 = pnand %p525_p0, %p871_p5  ;;  %s528_s25 = sshll.u32 %s615_s12, 4  ;;  %s529_s25 = int_to_ptr.vmem [resolvable:$false] %s528_s25 }
  0x5c   : > { %s530_s26 = scalar_lea.vmem %s529_s25, 256  ;;  %p531_p10 = scmp.lt.s32.totalorder %s809_s19, %s529_s25 }
  0x5d   : > { %p527_p4 = pneg %p526_p7  ;;  %p532_p12 = scmp.lt.s32.totalorder %s530_s26, %s524_s29 }
  0x5f   : > { %237 = vadd.xlane.f32.xlu0 %v225_v5  ;;  %p533_p1 = por %p532_p12, %p531_p10 }
  0x61   : > { %p534_p2 = pnand %p533_p1, %p527_p4 }
  0xe8   : > { %v247_v6 = vpop.xlane.xlu0 %246 }
  0xe9   : > { %v248_v7 = vrot.slane %v247_v6, 4 }
  0xeb   : > { %v249_v8 = vadd.f32 %v248_v7, %v247_v6 }
  0xec   : > { %v238_v9 = vpop.xlane.xlu0 %237 }
  0xed   : > { %v250_v10 = vrot.slane %v249_v8, 2  ;;  %v239_v11 = vrot.slane %v238_v9, 4 }
  0xef   : > { %v251_v12 = vadd.f32 %v250_v10, %v249_v8  ;;  %v240_v13 = vadd.f32 %v239_v11, %v238_v9 }
  0xf1   : > { %v252_v14 = vrot.slane %v251_v12, 1  ;;  %v241_v15 = vrot.slane %v240_v13, 2 }
  0xf3   : > { %v253_v16 = vadd.f32 %v252_v14, %v251_v12  ;;  %v242_v17 = vadd.f32 %v241_v15, %v240_v13 }
  0xf5   : > { %v256_v18 = vadd.f32 1e-06, %v253_v16  ;;  %v243_v19 = vrot.slane %v242_v17, 1 }
  0xf7   : > { %462 = vrcp.f32 %v256_v18  ;;  %v244_v20 = vadd.f32 %v243_v19, %v242_v17 }
  0xf9   : > { %v254_v21 = vmul.f32 2.0, %v244_v20 }
  0xfb   : > { %v255_v22 = vadd.f32 1e-06, %v254_v21 }
 0x101   : > { %v463_v23 = vpop.eup %462 }
 0x102   : > { %v258_v24 = vmul.f32 %v463_v23, %v255_v22 }
 0x104   : > { %259 = vst [vmem:[%s213_s16] sm:$0xff] %v258_v24 }
 0x105   : > { %537 = shalt.err (!%p534_p2)
}
 0x106   : > { %s538_s3 = scalar_lea.hbm %s807_s27, 128  ;;  %s542_s18 = scalar_lea.hbm %s858_s2, 256 }
 0x107   : > { %p539_p9 = scmp.ne.s32.totalorder %s807_s27, %s538_s3  ;;  %p543_p6 = scmp.lt.u32.totalorder %s807_s27, %s858_s2 }
 0x108   : > { %p544_p13 = scmp.lt.u32.totalorder %s542_s18, %s538_s3  ;;  %p546_p0 = scmp.lt.u32.totalorder %s538_s3, %s807_s27 }
 0x109   : > { %p540_p11 = pnand %p539_p9, %p871_p5 }
 0x10a   : > { %p545_p8 = por %p544_p13, %p543_p6 }
 0x10b   : > { %p541_p3 = pneg %p540_p11 }
 0x10c   : > { %p547_p7 = por %p546_p0, %p545_p8 }
 0x10e   : > { %p548_p4 = pnand %p547_p7, %p541_p3 }
 0x110   : > { %551 = shalt.err (!%p548_p4)
}
 0x111   : > { %398 = dma.vmem_to_hbm [thread:$0]  (%p871_p5), %s809_s19, 128, %s807_s27, %s261_s28  }
 0x112 PF: > { %s286_s5 = sand.u32 1, %s590_s9   ;;  %p872_p10 = scmp.ne.s32.totalorder %s864_s24, 0 }
 0x113   : > { %p873_p12 = scmp.ge.s32.totalorder %s610_s14, 2  ;;  %s287_s7 = scalar_lea.sflag [#allocation6], %s286_s5 }
 0x115   : > { %p408_p1 = pnand %p873_p12, %p872_p10 }
 0x117   : > { %585 = dma.done.wait (!%p408_p1), %s287_s7, 128  }
 0x118   : > { %587 = vsyncadd (!%p408_p1), %s287_s7, 4294967168  ;;  %s21_s14 = sadd.s32 1, %s610_s14   ;;  %s874_s9 = smov %s594_s10 }
 0x119   : > { %p18_p2 = scmp.ge.s32.totalorder %s21_s14, 4   ;;  %s875_s10 = smov %s598_s11 }
 0x11a   : > { %s876_s11 = smov %s687_s23  ;;  %s877_s12 = smov %s606_s13 }
 0x11b   : > { %s878_s13 = smov %s880_s17  ;;  %20 = sbr.rel (!%p18_p2) target bundleno = 8 (0x8), region = 94 }
 0x122   :  { %292 = vsyncpa [#allocation5], 1 }
 0x123   :  { %294 = vsyncpa [#allocation5 + $0x1], 1 }
 0x124   :  { %295 = vsyncpa [#allocation8], 1 }
 0x125   :  { %297 = vsyncpa [#allocation8 + $0x1], 1 }
 0x126   :  { %298 = vsyncpa [#allocation6], 1 }
 0x127   :  { %300 = vsyncpa [#allocation6 + $0x1], 1 }

</bundles_post_ra>
